<compile_context>
chip_gen: v7x
topology: tpu7x:2x2x1
jax: 0.10.0
libtpu: 0.0.40
codegen_flags: <defaults>
</compile_context>

<pallas_src>
import math
from functools import partial

import jax
import jax.numpy as jnp
from jax.experimental import pallas as pl
from jax.experimental.pallas import tpu as pltpu

# ---- model config (small, BERT-like) ----
BATCH = 2
SEQ = 8
HIDDEN = 32
NUM_HEADS = 4
HEAD_DIM = HIDDEN // NUM_HEADS
LN_EPS = 1e-12  # BERT LayerNorm eps
NEG_BIG = -1e9  # cross-batch block kill value (exp() underflows to exactly 0)


def _bit_attention_kernel(x_ref, mask_ref, wqkv_ref, bqkv_ref,
                          wo_ref, bo_ref, gamma_ref, beta_ref, out_ref):
    """Single invocation: whole (B*S, D) problem resident in VMEM, batches fused."""
    x = x_ref[...]                                            # (M, D) f32, M = B*S

    # Fused QKV projection (scale already folded into the Q columns of W/b).
    qkv = jnp.dot(x, wqkv_ref[...],
                  preferred_element_type=jnp.float32) + bqkv_ref[...]   # (M, 3D)

    # One XLU transpose of the whole K block; per-head use is a sublane slice.
    kT = qkv[:, HIDDEN:2 * HIDDEN].T                          # (D, M)

    mask = mask_ref[...]                                      # (M, M) block-diag additive mask

    proj = None
    for h in range(NUM_HEADS):                                # static unroll (H=4)
        cq = slice(h * HEAD_DIM, (h + 1) * HEAD_DIM)
        cv = slice(2 * HIDDEN + h * HEAD_DIM, 2 * HIDDEN + (h + 1) * HEAD_DIM)

        qh = qkv[:, cq]                                       # (M, Dh)
        kTh = kT[cq, :]                                       # (Dh, M) sublane slice
        vh = qkv[:, cv]                                       # (M, Dh)

        # Scores over BOTH batches at once; mask applied before max-subtraction
        # so cross-batch entries cannot leak into the softmax.
        s = jnp.dot(qh, kTh, preferred_element_type=jnp.float32) + mask   # (M, M)
        s = s - jnp.max(s, axis=-1, keepdims=True)            # stable softmax
        e = jnp.exp(s)
        l = jnp.sum(e, axis=-1, keepdims=True)                # (M, 1)

        # Normalize on ctx (M x Dh) instead of on P (M x M).
        ctx_h = jnp.dot(e, vh, preferred_element_type=jnp.float32)        # (M, Dh)
        ctx_h = ctx_h * pl.reciprocal(l)                      # exact (keeps 1e-4 tol)

        # Distribute the output dense per head: static sublane slice of Wo.
        term = jnp.dot(ctx_h, wo_ref[cq, :], preferred_element_type=jnp.float32)
        proj = term if proj is None else proj + term

    proj = proj + bo_ref[...]                                 # (M, D)

    # BertSelfOutput: dense -> (dropout=id) -> residual -> LayerNorm
    y = proj + x
    mu = jnp.mean(y, axis=-1, keepdims=True)
    var = jnp.mean(jnp.square(y - mu), axis=-1, keepdims=True)
    y = (y - mu) * jax.lax.rsqrt(var + LN_EPS)
    y = y * gamma_ref[...] + beta_ref[...]

    out_ref[...] = y.astype(out_ref.dtype)


def prepare_params(wq, bq, wk, bk, wv, bv, wo, bo, gamma, beta):
    """Once-per-init parameter fusion (kept OFF the per-call jit critical path)."""
    scale = 1.0 / math.sqrt(HEAD_DIM)
    wqkv = jnp.concatenate([wq * scale, wk, wv], axis=1)              # (D, 3D)
    bqkv = jnp.concatenate([bq * scale, bk, bv]).reshape(1, 3 * HIDDEN)
    return (wqkv, bqkv, wo,
            bo.reshape(1, HIDDEN), gamma.reshape(1, HIDDEN), beta.reshape(1, HIDDEN))


@partial(jax.jit, static_argnames=())
def bit_attention(x, attention_mask, wqkv, bqkv, wo, bo2, g2, be2):
    B, S, D = x.shape
    M = B * S
    x2 = x.reshape(M, D)                                      # flatten batch*seq (free in XLA)

    # Build the fused (M, M) additive mask: attention_mask broadcast over query
    # positions inside each batch block, -1e9 on all cross-batch blocks.
    m = attention_mask.reshape(B, S)                          # (B, S)
    keym = jnp.broadcast_to(m.reshape(1, M), (M, M))          # [row, bk*S+k] = m[bk, k]
    bids = jnp.arange(M, dtype=jnp.int32) // S
    same = bids[:, None] == bids[None, :]
    mask_full = jnp.where(same, keym, jnp.float32(NEG_BIG))   # (M, M)

    full = lambda i: (0, 0)
    in_specs = [
        pl.BlockSpec((M, D), full),           # x (flattened)
        pl.BlockSpec((M, M), full),           # fused block-diagonal additive mask
        pl.BlockSpec((D, 3 * D), full),       # W_qkv (scale folded into Q cols)
        pl.BlockSpec((1, 3 * D), full),       # b_qkv
        pl.BlockSpec((D, D), full),           # W_o
        pl.BlockSpec((1, D), full),           # b_o
        pl.BlockSpec((1, D), full),           # gamma
        pl.BlockSpec((1, D), full),           # beta
    ]
    out_spec = pl.BlockSpec((M, D), full)

    out2 = pl.pallas_call(
        _bit_attention_kernel,
        out_shape=jax.ShapeDtypeStruct((M, D), x.dtype),
        grid=(1,),
        in_specs=in_specs,
        out_specs=out_spec,
        compiler_params=pltpu.CompilerParams(dimension_semantics=("arbitrary",)),
    )(x2, mask_full, wqkv, bqkv, wo, bo2, g2, be2)

    return out2.reshape(B, S, D)


def _reference(x, mask, wq, bq, wk, bk, wv, bv, wo, bo, gamma, beta):
    """Pure-jnp reference mirroring the PyTorch forward (offsets=None, eval)."""
    B, S, D = x.shape
    q = x @ wq + bq
    k = x @ wk + bk
    v = x @ wv + bv

    def split(t):  # (B, S, D) -> (B, H, S, Dh)
        return t.reshape(B, S, NUM_HEADS, HEAD_DIM).transpose(0, 2, 1, 3)

    qh, kh, vh = split(q), split(k), split(v)
    scores = jnp.einsum('bhqd,bhkd->bhqk', qh, kh) / math.sqrt(HEAD_DIM)
    scores = scores + mask[:, None, :, :]       # (B,1,1,S) broadcast
    probs = jax.nn.softmax(scores, axis=-1)
    ctx = jnp.einsum('bhqk,bhkd->bhqd', probs, vh)
    ctx = ctx.transpose(0, 2, 1, 3).reshape(B, S, D)
    out = ctx @ wo + bo
    y = out + x
    mu = jnp.mean(y, axis=-1, keepdims=True)
    var = jnp.mean((y - mu) ** 2, axis=-1, keepdims=True)
    return (y - mu) / jnp.sqrt(var + LN_EPS) * gamma + beta


if __name__ == "__main__":
    key = jax.random.PRNGKey(0)
    ks = jax.random.split(key, 12)

    x = jax.random.normal(ks[0], (BATCH, SEQ, HIDDEN), dtype=jnp.float32)
    # extended additive attention mask: mask out the last 2 positions of batch 1
    pad = jnp.zeros((BATCH, 1, SEQ), dtype=jnp.float32)
    pad = pad.at[1, 0, -2:].set(-10000.0)

    s = 0.05
    wq = s * jax.random.normal(ks[1], (HIDDEN, HIDDEN), dtype=jnp.float32)
    wk = s * jax.random.normal(ks[2], (HIDDEN, HIDDEN), dtype=jnp.float32)
    wv = s * jax.random.normal(ks[3], (HIDDEN, HIDDEN), dtype=jnp.float32)
    wo = s * jax.random.normal(ks[4], (HIDDEN, HIDDEN), dtype=jnp.float32)
    bq = s * jax.random.normal(ks[5], (HIDDEN,), dtype=jnp.float32)
    bk = s * jax.random.normal(ks[6], (HIDDEN,), dtype=jnp.float32)
    bv = s * jax.random.normal(ks[7], (HIDDEN,), dtype=jnp.float32)
    bo = s * jax.random.normal(ks[8], (HIDDEN,), dtype=jnp.float32)
    gamma = 1.0 + 0.1 * jax.random.normal(ks[9], (HIDDEN,), dtype=jnp.float32)
    beta = 0.1 * jax.random.normal(ks[10], (HIDDEN,), dtype=jnp.float32)

    # Parameter fusion done once at "init", outside the per-call jit path.
    fused = prepare_params(wq, bq, wk, bk, wv, bv, wo, bo, gamma, beta)
    fused = jax.block_until_ready(fused)

    out = bit_attention(x, pad, *fused)
    out = jax.block_until_ready(out)

    ref = _reference(x, pad, wq, bq, wk, bk, wv, bv, wo, bo, gamma, beta)
    assert out.shape == (BATCH, SEQ, HIDDEN)
    assert jnp.allclose(out, ref, atol=1e-4, rtol=1e-4), float(jnp.max(jnp.abs(out - ref)))

    print("KERNEL_OK")
</pallas_src>

<mosaic_0001>
module attributes {stable_mosaic.version = 11 : i64} {
  func.func @_bit_attention_kernel(%arg0: i32, %arg1: memref<16x32xf32, #tpu.memory_space<vmem>>, %arg2: memref<16x16xf32, #tpu.memory_space<vmem>>, %arg3: memref<32x96xf32, #tpu.memory_space<vmem>>, %arg4: memref<1x96xf32, #tpu.memory_space<vmem>>, %arg5: memref<32x32xf32, #tpu.memory_space<vmem>>, %arg6: memref<1x32xf32, #tpu.memory_space<vmem>>, %arg7: memref<1x32xf32, #tpu.memory_space<vmem>>, %arg8: memref<1x32xf32, #tpu.memory_space<vmem>>, %arg9: memref<16x32xf32, #tpu.memory_space<vmem>>) attributes {dimension_semantics = [#tpu.dimension_semantics<arbitrary>], iteration_bounds = array<i64: 1>, scalar_prefetch = 0 : i64, scratch_operands = 0 : i64, tpu.core_type = #tpu.core_type<tc>, window_params = [{pipeline_mode = #tpu.pipeline_mode<synchronous>, transform_indices = @transform_0, window_bounds = array<i64: 16, 32>}, {pipeline_mode = #tpu.pipeline_mode<synchronous>, transform_indices = @transform_1, window_bounds = array<i64: 16, 16>}, {pipeline_mode = #tpu.pipeline_mode<synchronous>, transform_indices = @transform_2, window_bounds = array<i64: 32, 96>}, {pipeline_mode = #tpu.pipeline_mode<synchronous>, transform_indices = @transform_3, window_bounds = array<i64: 1, 96>}, {pipeline_mode = #tpu.pipeline_mode<synchronous>, transform_indices = @transform_4, window_bounds = array<i64: 32, 32>}, {pipeline_mode = #tpu.pipeline_mode<synchronous>, transform_indices = @transform_5, window_bounds = array<i64: 1, 32>}, {pipeline_mode = #tpu.pipeline_mode<synchronous>, transform_indices = @transform_6, window_bounds = array<i64: 1, 32>}, {pipeline_mode = #tpu.pipeline_mode<synchronous>, transform_indices = @transform_7, window_bounds = array<i64: 1, 32>}, {pipeline_mode = #tpu.pipeline_mode<synchronous>, transform_indices = @transform_8, window_bounds = array<i64: 16, 32>}]} {
    %c0 = arith.constant 0 : index
    %c0_0 = arith.constant 0 : index
    %0 = vector.load %arg1[%c0, %c0_0] : memref<16x32xf32, #tpu.memory_space<vmem>>, vector<16x32xf32>
    %c0_1 = arith.constant 0 : index
    %c0_2 = arith.constant 0 : index
    %1 = vector.load %arg3[%c0_1, %c0_2] : memref<32x96xf32, #tpu.memory_space<vmem>>, vector<32x96xf32>
    %cst = arith.constant dense<0.000000e+00> : vector<16x96xf32>
    %2 = tpu.matmul %0, %1, %cst {dimension_numbers = #tpu.dot_dimension_numbers<[1], [0], [0], [1], [0, 0, 1, 1], [], []>} : vector<16x32xf32>, vector<32x96xf32>, vector<16x96xf32> -> vector<16x96xf32>
    %c0_3 = arith.constant 0 : index
    %c0_4 = arith.constant 0 : index
    %3 = vector.load %arg4[%c0_3, %c0_4] : memref<1x96xf32, #tpu.memory_space<vmem>>, vector<1x96xf32>
    %4 = vector.broadcast %3 : vector<1x96xf32> to vector<16x96xf32>
    %5 = arith.addf %2, %4 : vector<16x96xf32>
    %6 = vector.extract_strided_slice %5 {offsets = [0, 32], sizes = [16, 32], strides = [1, 1]} : vector<16x96xf32> to vector<16x32xf32>
    %7 = tpu.transpose %6, [1, 0] : vector<16x32xf32> -> vector<32x16xf32>
    %c0_5 = arith.constant 0 : index
    %c0_6 = arith.constant 0 : index
    %8 = vector.load %arg2[%c0_5, %c0_6] : memref<16x16xf32, #tpu.memory_space<vmem>>, vector<16x16xf32>
    %9 = vector.extract_strided_slice %5 {offsets = [0, 0], sizes = [16, 8], strides = [1, 1]} : vector<16x96xf32> to vector<16x8xf32>
    %10 = vector.extract_strided_slice %7 {offsets = [0, 0], sizes = [8, 16], strides = [1, 1]} : vector<32x16xf32> to vector<8x16xf32>
    %11 = vector.extract_strided_slice %5 {offsets = [0, 64], sizes = [16, 8], strides = [1, 1]} : vector<16x96xf32> to vector<16x8xf32>
    %cst_7 = arith.constant dense<0.000000e+00> : vector<16x16xf32>
    %12 = tpu.matmul %9, %10, %cst_7 {dimension_numbers = #tpu.dot_dimension_numbers<[1], [0], [0], [1], [0, 0, 1, 1], [], []>} : vector<16x8xf32>, vector<8x16xf32>, vector<16x16xf32> -> vector<16x16xf32>
    %13 = arith.addf %12, %8 : vector<16x16xf32>
    %cst_8 = arith.constant dense<0xFF800000> : vector<16xf32>
    %14 = vector.multi_reduction <maximumf>, %13, %cst_8 [1] : vector<16x16xf32> to vector<16xf32>
    %15 = vector.shape_cast %14 : vector<16xf32> to vector<16x1xf32>
    %16 = vector.broadcast %15 : vector<16x1xf32> to vector<16x16xf32>
    %17 = arith.subf %13, %16 : vector<16x16xf32>
    %18 = math.exp %17 : vector<16x16xf32>
    %cst_9 = arith.constant dense<0.000000e+00> : vector<16xf32>
    %19 = vector.multi_reduction <add>, %18, %cst_9 [1] : vector<16x16xf32> to vector<16xf32>
    %20 = vector.shape_cast %19 : vector<16xf32> to vector<16x1xf32>
    %cst_10 = arith.constant dense<0.000000e+00> : vector<16x8xf32>
    %21 = tpu.matmul %18, %11, %cst_10 {dimension_numbers = #tpu.dot_dimension_numbers<[1], [0], [0], [1], [0, 0, 1, 1], [], []>} : vector<16x16xf32>, vector<16x8xf32>, vector<16x8xf32> -> vector<16x8xf32>
    %22 = tpu.reciprocal %20 : vector<16x1xf32> -> vector<16x1xf32>
    %23 = vector.broadcast %22 : vector<16x1xf32> to vector<16x8xf32>
    %24 = arith.mulf %21, %23 : vector<16x8xf32>
    %c0_11 = arith.constant 0 : index
    %c0_12 = arith.constant 0 : index
    %25 = vector.load %arg5[%c0_11, %c0_12] : memref<32x32xf32, #tpu.memory_space<vmem>>, vector<8x32xf32>
    %cst_13 = arith.constant dense<0.000000e+00> : vector<16x32xf32>
    %26 = tpu.matmul %24, %25, %cst_13 {dimension_numbers = #tpu.dot_dimension_numbers<[1], [0], [0], [1], [0, 0, 1, 1], [], []>} : vector<16x8xf32>, vector<8x32xf32>, vector<16x32xf32> -> vector<16x32xf32>
    %27 = vector.extract_strided_slice %5 {offsets = [0, 8], sizes = [16, 8], strides = [1, 1]} : vector<16x96xf32> to vector<16x8xf32>
    %28 = vector.extract_strided_slice %7 {offsets = [8, 0], sizes = [8, 16], strides = [1, 1]} : vector<32x16xf32> to vector<8x16xf32>
    %29 = vector.extract_strided_slice %5 {offsets = [0, 72], sizes = [16, 8], strides = [1, 1]} : vector<16x96xf32> to vector<16x8xf32>
    %cst_14 = arith.constant dense<0.000000e+00> : vector<16x16xf32>
    %30 = tpu.matmul %27, %28, %cst_14 {dimension_numbers = #tpu.dot_dimension_numbers<[1], [0], [0], [1], [0, 0, 1, 1], [], []>} : vector<16x8xf32>, vector<8x16xf32>, vector<16x16xf32> -> vector<16x16xf32>
    %31 = arith.addf %30, %8 : vector<16x16xf32>
    %cst_15 = arith.constant dense<0xFF800000> : vector<16xf32>
    %32 = vector.multi_reduction <maximumf>, %31, %cst_15 [1] : vector<16x16xf32> to vector<16xf32>
    %33 = vector.shape_cast %32 : vector<16xf32> to vector<16x1xf32>
    %34 = vector.broadcast %33 : vector<16x1xf32> to vector<16x16xf32>
    %35 = arith.subf %31, %34 : vector<16x16xf32>
    %36 = math.exp %35 : vector<16x16xf32>
    %cst_16 = arith.constant dense<0.000000e+00> : vector<16xf32>
    %37 = vector.multi_reduction <add>, %36, %cst_16 [1] : vector<16x16xf32> to vector<16xf32>
    %38 = vector.shape_cast %37 : vector<16xf32> to vector<16x1xf32>
    %cst_17 = arith.constant dense<0.000000e+00> : vector<16x8xf32>
    %39 = tpu.matmul %36, %29, %cst_17 {dimension_numbers = #tpu.dot_dimension_numbers<[1], [0], [0], [1], [0, 0, 1, 1], [], []>} : vector<16x16xf32>, vector<16x8xf32>, vector<16x8xf32> -> vector<16x8xf32>
    %40 = tpu.reciprocal %38 : vector<16x1xf32> -> vector<16x1xf32>
    %41 = vector.broadcast %40 : vector<16x1xf32> to vector<16x8xf32>
    %42 = arith.mulf %39, %41 : vector<16x8xf32>
    %c8 = arith.constant 8 : index
    %c0_18 = arith.constant 0 : index
    %43 = vector.load %arg5[%c8, %c0_18] : memref<32x32xf32, #tpu.memory_space<vmem>>, vector<8x32xf32>
    %cst_19 = arith.constant dense<0.000000e+00> : vector<16x32xf32>
    %44 = tpu.matmul %42, %43, %cst_19 {dimension_numbers = #tpu.dot_dimension_numbers<[1], [0], [0], [1], [0, 0, 1, 1], [], []>} : vector<16x8xf32>, vector<8x32xf32>, vector<16x32xf32> -> vector<16x32xf32>
    %45 = arith.addf %26, %44 : vector<16x32xf32>
    %46 = vector.extract_strided_slice %5 {offsets = [0, 16], sizes = [16, 8], strides = [1, 1]} : vector<16x96xf32> to vector<16x8xf32>
    %47 = vector.extract_strided_slice %7 {offsets = [16, 0], sizes = [8, 16], strides = [1, 1]} : vector<32x16xf32> to vector<8x16xf32>
    %48 = vector.extract_strided_slice %5 {offsets = [0, 80], sizes = [16, 8], strides = [1, 1]} : vector<16x96xf32> to vector<16x8xf32>
    %cst_20 = arith.constant dense<0.000000e+00> : vector<16x16xf32>
    %49 = tpu.matmul %46, %47, %cst_20 {dimension_numbers = #tpu.dot_dimension_numbers<[1], [0], [0], [1], [0, 0, 1, 1], [], []>} : vector<16x8xf32>, vector<8x16xf32>, vector<16x16xf32> -> vector<16x16xf32>
    %50 = arith.addf %49, %8 : vector<16x16xf32>
    %cst_21 = arith.constant dense<0xFF800000> : vector<16xf32>
    %51 = vector.multi_reduction <maximumf>, %50, %cst_21 [1] : vector<16x16xf32> to vector<16xf32>
    %52 = vector.shape_cast %51 : vector<16xf32> to vector<16x1xf32>
    %53 = vector.broadcast %52 : vector<16x1xf32> to vector<16x16xf32>
    %54 = arith.subf %50, %53 : vector<16x16xf32>
    %55 = math.exp %54 : vector<16x16xf32>
    %cst_22 = arith.constant dense<0.000000e+00> : vector<16xf32>
    %56 = vector.multi_reduction <add>, %55, %cst_22 [1] : vector<16x16xf32> to vector<16xf32>
    %57 = vector.shape_cast %56 : vector<16xf32> to vector<16x1xf32>
    %cst_23 = arith.constant dense<0.000000e+00> : vector<16x8xf32>
    %58 = tpu.matmul %55, %48, %cst_23 {dimension_numbers = #tpu.dot_dimension_numbers<[1], [0], [0], [1], [0, 0, 1, 1], [], []>} : vector<16x16xf32>, vector<16x8xf32>, vector<16x8xf32> -> vector<16x8xf32>
    %59 = tpu.reciprocal %57 : vector<16x1xf32> -> vector<16x1xf32>
    %60 = vector.broadcast %59 : vector<16x1xf32> to vector<16x8xf32>
    %61 = arith.mulf %58, %60 : vector<16x8xf32>
    %c16 = arith.constant 16 : index
    %c0_24 = arith.constant 0 : index
    %62 = vector.load %arg5[%c16, %c0_24] : memref<32x32xf32, #tpu.memory_space<vmem>>, vector<8x32xf32>
    %cst_25 = arith.constant dense<0.000000e+00> : vector<16x32xf32>
    %63 = tpu.matmul %61, %62, %cst_25 {dimension_numbers = #tpu.dot_dimension_numbers<[1], [0], [0], [1], [0, 0, 1, 1], [], []>} : vector<16x8xf32>, vector<8x32xf32>, vector<16x32xf32> -> vector<16x32xf32>
    %64 = arith.addf %45, %63 : vector<16x32xf32>
    %65 = vector.extract_strided_slice %5 {offsets = [0, 24], sizes = [16, 8], strides = [1, 1]} : vector<16x96xf32> to vector<16x8xf32>
    %66 = vector.extract_strided_slice %7 {offsets = [24, 0], sizes = [8, 16], strides = [1, 1]} : vector<32x16xf32> to vector<8x16xf32>
    %67 = vector.extract_strided_slice %5 {offsets = [0, 88], sizes = [16, 8], strides = [1, 1]} : vector<16x96xf32> to vector<16x8xf32>
    %cst_26 = arith.constant dense<0.000000e+00> : vector<16x16xf32>
    %68 = tpu.matmul %65, %66, %cst_26 {dimension_numbers = #tpu.dot_dimension_numbers<[1], [0], [0], [1], [0, 0, 1, 1], [], []>} : vector<16x8xf32>, vector<8x16xf32>, vector<16x16xf32> -> vector<16x16xf32>
    %69 = arith.addf %68, %8 : vector<16x16xf32>
    %cst_27 = arith.constant dense<0xFF800000> : vector<16xf32>
    %70 = vector.multi_reduction <maximumf>, %69, %cst_27 [1] : vector<16x16xf32> to vector<16xf32>
    %71 = vector.shape_cast %70 : vector<16xf32> to vector<16x1xf32>
    %72 = vector.broadcast %71 : vector<16x1xf32> to vector<16x16xf32>
    %73 = arith.subf %69, %72 : vector<16x16xf32>
    %74 = math.exp %73 : vector<16x16xf32>
    %cst_28 = arith.constant dense<0.000000e+00> : vector<16xf32>
    %75 = vector.multi_reduction <add>, %74, %cst_28 [1] : vector<16x16xf32> to vector<16xf32>
    %76 = vector.shape_cast %75 : vector<16xf32> to vector<16x1xf32>
    %cst_29 = arith.constant dense<0.000000e+00> : vector<16x8xf32>
    %77 = tpu.matmul %74, %67, %cst_29 {dimension_numbers = #tpu.dot_dimension_numbers<[1], [0], [0], [1], [0, 0, 1, 1], [], []>} : vector<16x16xf32>, vector<16x8xf32>, vector<16x8xf32> -> vector<16x8xf32>
    %78 = tpu.reciprocal %76 : vector<16x1xf32> -> vector<16x1xf32>
    %79 = vector.broadcast %78 : vector<16x1xf32> to vector<16x8xf32>
    %80 = arith.mulf %77, %79 : vector<16x8xf32>
    %c24 = arith.constant 24 : index
    %c0_30 = arith.constant 0 : index
    %81 = vector.load %arg5[%c24, %c0_30] : memref<32x32xf32, #tpu.memory_space<vmem>>, vector<8x32xf32>
    %cst_31 = arith.constant dense<0.000000e+00> : vector<16x32xf32>
    %82 = tpu.matmul %80, %81, %cst_31 {dimension_numbers = #tpu.dot_dimension_numbers<[1], [0], [0], [1], [0, 0, 1, 1], [], []>} : vector<16x8xf32>, vector<8x32xf32>, vector<16x32xf32> -> vector<16x32xf32>
    %83 = arith.addf %64, %82 : vector<16x32xf32>
    %c0_32 = arith.constant 0 : index
    %c0_33 = arith.constant 0 : index
    %84 = vector.load %arg6[%c0_32, %c0_33] : memref<1x32xf32, #tpu.memory_space<vmem>>, vector<1x32xf32>
    %85 = vector.broadcast %84 : vector<1x32xf32> to vector<16x32xf32>
    %86 = arith.addf %83, %85 : vector<16x32xf32>
    %87 = arith.addf %86, %0 : vector<16x32xf32>
    %cst_34 = arith.constant dense<0.000000e+00> : vector<16xf32>
    %88 = vector.multi_reduction <add>, %87, %cst_34 [1] : vector<16x32xf32> to vector<16xf32>
    %89 = vector.shape_cast %88 : vector<16xf32> to vector<16x1xf32>
    %cst_35 = arith.constant 3.200000e+01 : f32
    %90 = vector.broadcast %cst_35 : f32 to vector<16x1xf32>
    %91 = arith.divf %89, %90 : vector<16x1xf32>
    %92 = vector.broadcast %91 : vector<16x1xf32> to vector<16x32xf32>
    %93 = arith.subf %87, %92 : vector<16x32xf32>
    %94 = arith.mulf %93, %93 : vector<16x32xf32>
    %cst_36 = arith.constant dense<0.000000e+00> : vector<16xf32>
    %95 = vector.multi_reduction <add>, %94, %cst_36 [1] : vector<16x32xf32> to vector<16xf32>
    %96 = vector.shape_cast %95 : vector<16xf32> to vector<16x1xf32>
    %cst_37 = arith.constant 3.200000e+01 : f32
    %97 = vector.broadcast %cst_37 : f32 to vector<16x1xf32>
    %98 = arith.divf %96, %97 : vector<16x1xf32>
    %99 = vector.broadcast %91 : vector<16x1xf32> to vector<16x32xf32>
    %100 = arith.subf %87, %99 : vector<16x32xf32>
    %cst_38 = arith.constant 9.99999996E-13 : f32
    %101 = vector.broadcast %cst_38 : f32 to vector<16x1xf32>
    %102 = arith.addf %98, %101 : vector<16x1xf32>
    %103 = math.rsqrt %102 : vector<16x1xf32>
    %104 = vector.broadcast %103 : vector<16x1xf32> to vector<16x32xf32>
    %105 = arith.mulf %100, %104 : vector<16x32xf32>
    %c0_39 = arith.constant 0 : index
    %c0_40 = arith.constant 0 : index
    %106 = vector.load %arg7[%c0_39, %c0_40] : memref<1x32xf32, #tpu.memory_space<vmem>>, vector<1x32xf32>
    %107 = vector.broadcast %106 : vector<1x32xf32> to vector<16x32xf32>
    %108 = arith.mulf %105, %107 : vector<16x32xf32>
    %c0_41 = arith.constant 0 : index
    %c0_42 = arith.constant 0 : index
    %109 = vector.load %arg8[%c0_41, %c0_42] : memref<1x32xf32, #tpu.memory_space<vmem>>, vector<1x32xf32>
    %110 = vector.broadcast %109 : vector<1x32xf32> to vector<16x32xf32>
    %111 = arith.addf %108, %110 : vector<16x32xf32>
    %c0_43 = arith.constant 0 : index
    %c0_44 = arith.constant 0 : index
    %112 = vector.load %arg9[%c0_43, %c0_44] : memref<16x32xf32, #tpu.memory_space<vmem>>, vector<16x32xf32>
    tpu.vector_store %arg9[%c0_43, %c0_44], %111 {strides = array<i32>} : memref<16x32xf32, #tpu.memory_space<vmem>>, vector<16x32xf32>,
    return
  }
  func.func @transform_0(%arg0: i32) -> (i32, i32) {
    %c0_i32 = arith.constant 0 : i32
    %c0_i32_0 = arith.constant 0 : i32
    %c0_i32_1 = arith.constant 0 : i32
    return %c0_i32, %c0_i32_0 : i32, i32
  }
  func.func @transform_1(%arg0: i32) -> (i32, i32) {
    %c0_i32 = arith.constant 0 : i32
    %c0_i32_0 = arith.constant 0 : i32
    %c0_i32_1 = arith.constant 0 : i32
    return %c0_i32, %c0_i32_0 : i32, i32
  }
  func.func @transform_2(%arg0: i32) -> (i32, i32) {
    %c0_i32 = arith.constant 0 : i32
    %c0_i32_0 = arith.constant 0 : i32
    %c0_i32_1 = arith.constant 0 : i32
    return %c0_i32, %c0_i32_0 : i32, i32
  }
  func.func @transform_3(%arg0: i32) -> (i32, i32) {
    %c0_i32 = arith.constant 0 : i32
    %c0_i32_0 = arith.constant 0 : i32
    %c0_i32_1 = arith.constant 0 : i32
    return %c0_i32, %c0_i32_0 : i32, i32
  }
  func.func @transform_4(%arg0: i32) -> (i32, i32) {
    %c0_i32 = arith.constant 0 : i32
    %c0_i32_0 = arith.constant 0 : i32
    %c0_i32_1 = arith.constant 0 : i32
    return %c0_i32, %c0_i32_0 : i32, i32
  }
  func.func @transform_5(%arg0: i32) -> (i32, i32) {
    %c0_i32 = arith.constant 0 : i32
    %c0_i32_0 = arith.constant 0 : i32
    %c0_i32_1 = arith.constant 0 : i32
    return %c0_i32, %c0_i32_0 : i32, i32
  }
  func.func @transform_6(%arg0: i32) -> (i32, i32) {
    %c0_i32 = arith.constant 0 : i32
    %c0_i32_0 = arith.constant 0 : i32
    %c0_i32_1 = arith.constant 0 : i32
    return %c0_i32, %c0_i32_0 : i32, i32
  }
  func.func @transform_7(%arg0: i32) -> (i32, i32) {
    %c0_i32 = arith.constant 0 : i32
    %c0_i32_0 = arith.constant 0 : i32
    %c0_i32_1 = arith.constant 0 : i32
    return %c0_i32, %c0_i32_0 : i32, i32
  }
  func.func @transform_8(%arg0: i32) -> (i32, i32) {
    %c0_i32 = arith.constant 0 : i32
    %c0_i32_0 = arith.constant 0 : i32
    %c0_i32_1 = arith.constant 0 : i32
    return %c0_i32, %c0_i32_0 : i32, i32
  }
}

</mosaic_0001>

<bundles_post_ra>
// kernel: bit_attention.1
= control target key start
LH: loop header
LB: loop body
LE: loop exit
PB: predicated region body
PF: predicated region fallthrough
CT: control target
= control target key end

     0   :  { %13 = vsyncpa [#allocation3], 0  ;;  %s2020_s0 = inlined_call_operand.hbm [shape: f32[16,32], index: 0, kind: input, shape index: {}]   ;;  %s2021_s1 = inlined_call_operand.vmem [shape: f32[16,16], index: 1, kind: input, shape index: {}]   ;;  %s2022_s2 = inlined_call_operand.vmem [shape: f32[32,96], index: 2, kind: input, shape index: {}]   ;;  %s2023_s3 = inlined_call_operand.vmem [shape: f32[1,96], index: 3, kind: input, shape index: {}]   ;;  %s2024_s4 = inlined_call_operand.hbm [shape: f32[32,32], index: 4, kind: input, shape index: {}]   ;;  %s2025_s5 = inlined_call_operand.vmem [shape: f32[1,32], index: 5, kind: input, shape index: {}]   ;;  %s2026_s6 = inlined_call_operand.vmem [shape: f32[1,32], index: 6, kind: input, shape index: {}]   ;;  %s2027_s7 = inlined_call_operand.vmem [shape: f32[1,32], index: 7, kind: input, shape index: {}]   ;;  %s2028_s8 = inlined_call_operand.hbm [shape: f32[16,32], index: 8, kind: output, shape index: {}]  }
   0x1   :  { %14 = vsyncpa [#allocation6], 0 }
   0x2   :  { %15 = vsyncpa [#allocation4], 0  ;;  %s1756_s27 = smov [#allocation2]   ;;  %s1684_s9 = scalar_lea.hbm %s2020_s0, 256 }
   0x3   :  { %s21_s28 = sshll.u32 %s1756_s27, 4  ;;  %p1685_p0 = scmp.ne.s32.totalorder %s2020_s0, %s1684_s9  ;;  %s22_s28 = int_to_ptr.vmem [resolvable:$true] %s21_s28 }
   0x4   :  { %p1688_p1 = scmp.lt.u32.totalorder %s1684_s9, %s2020_s0 }
   0x6   :  { %p1690_p2 = pnand %p1688_p1, %p1685_p0 }
   0x8   :  { %1693 = shalt.err (!%p1690_p2)
}
   0x9   :  { %s1694_s14 = scalar_lea.vmem %s22_s28, 256  ;;  %p1699_p4 = scmp.lt.s32.totalorder %s22_s28, %s22_s28 }
   0xa   :  { %p1695_p3 = scmp.ne.s32.totalorder %s22_s28, %s1694_s14  ;;  %p1700_p5 = scmp.lt.s32.totalorder %s1694_s14, %s1694_s14 }
   0xc   :  { %p1701_p6 = por %p1700_p5, %p1699_p4 }
   0xe   :  { %p1702_p7 = pnand %p1701_p6, %p1695_p3 }
  0x10   :  { %1705 = shalt.err (!%p1702_p7)
}
  0x11   :  { %s1757_s15 = smov 128   ;;  %s1758_s16 = smov 8  }
  0x12   :  { %27 = dma.hbm_to_vmem [thread:$0]  %s2020_s0, 256, %s22_s28, [#allocation3], %s1757_s15, %s1757_s15, %s1758_s16  }
  0x13   :  { %s1759_s19 = smov [#allocation5]   ;;  %s1706_s23 = scalar_lea.hbm %s2024_s4, 512 }
  0x14   :  { %s39_s20 = sshll.u32 %s1759_s19, 4  ;;  %p1707_p8 = scmp.ne.s32.totalorder %s2024_s4, %s1706_s23  ;;  %s40_s20 = int_to_ptr.vmem [resolvable:$true] %s39_s20 }
  0x15   :  { %p1710_p9 = scmp.lt.u32.totalorder %s1706_s23, %s2024_s4 }
  0x17   :  { %p1712_p10 = pnand %p1710_p9, %p1707_p8 }
  0x19   :  { %1715 = shalt.err (!%p1712_p10)
}
  0x1a   :  { %s1716_s29 = scalar_lea.vmem %s40_s20, 512  ;;  %p1721_p12 = scmp.lt.s32.totalorder %s40_s20, %s40_s20 }
  0x1b   :  { %p1717_p11 = scmp.ne.s32.totalorder %s40_s20, %s1716_s29  ;;  %p1722_p13 = scmp.lt.s32.totalorder %s1716_s29, %s1716_s29 }
  0x1d   :  { %p1723_p0 = por %p1722_p13, %p1721_p12 }
  0x1f   :  { %p1724_p1 = pnand %p1723_p0, %p1717_p11 }
  0x21   :  { %1727 = shalt.err (!%p1724_p1)
}
  0x22   :  { %45 = dma.hbm_to_vmem [thread:$0]  %s2024_s4, 512, %s40_s20, [#allocation6], %s1757_s15, %s1757_s15, %s1758_s16  }
  0x23   :  { %1750 = dma.done.wait [#allocation3], 256  }
  0x24   :  { %1751 = vsyncadd [#allocation3], 4294967040 }
  0x25   :  { %1752 = dma.done.wait [#allocation6], 512  }
  0x26   :  { %1753 = vsyncadd [#allocation6], 4294966784  ;;  %vm71_vm0 = vcmask 261120   ;;  %v60_v0 = vld [vmem:[%s2022_s2] sm:$0xff]  ;;  %v61_v1 = vld [vmem:[%s2022_s2 + $0x8] sm:$0xff]  ;;  %vm161_vm1 = vcmask 64512  }
  0x27   :  { %v62_v2 = vld [vmem:[%s2022_s2 + $0x10] sm:$0xff]  ;;  %v1538_v3 = vpack.c.bf16 %v61_v1, %v60_v0  ;;  %v63_v4 = vld [vmem:[%s2022_s2 + $0x18] sm:$0xff]  ;;  %v1859_v5 = vld [vmem:[#allocation2] sm:$0xff]  ;;  %s1760_s2 = smov 96   ;;  %vm245_vm3 = vcmask 130048   ;;  %s1761_s22 = smov 64  }
  0x28   :  { %v1542_v6 = vpack.c.bf16 %v63_v4, %v62_v2  ;;  %1459 = vmatprep.mubr.msk.f32.mxu0 %vm71_vm0, %v1859_v5  ;;  %v1863_v7 = vld [vmem:[#allocation2 + $0x8] sm:$0xff]  ;;  %v1363_v8 = vld [vmem:[%s2023_s3] ss:$0 sm:$0xff]  ;;  %vm1883_vm2 = vmpackc.low %vm161_vm1, %vm161_vm1  ;;  %s1762_s23 = smov 88   ;;  %s1764_s24 = smov 120  }
  0x29   :  { %1539 = vmatprep.subr.bf16.mxu0 %v1538_v3  ;;  %v1896_v19 = vld [vmem:[%s2021_s1 + $0x8] sm:$0xff]  ;;  %v1901_v20 = vld [vmem:[%s2021_s1] sm:$0xff]  ;;  %s1763_s1 = smov 112   ;;  %s1765_s25 = smov 80  }
  0x2a   :  { %1541 = vmatpush3.bf16.msra.mxu0 %v1538_v3  ;;  %s1766_s26 = smov 56   ;;  %s1767_s27 = smov 72  }
  0x2b   :  { %1543 = vmatprep.subr.bf16.mxu0 %v1542_v6  ;;  %s1768_s29 = smov 104   ;;  %s1769_s0 = smov 48  }
  0x2c   :  { %s1770_s28 = smov 40   ;;  %s1771_s13 = smov [#allocation7]  }
  0x2d   :  { %s1350_s14 = sshll.u32 %s1771_s13, 4  ;;  %s1351_s14 = int_to_ptr.vmem [resolvable:$true] %s1350_s14 }
  0x2e   :  { %1545 = vmatpush3.bf16.msra.mxu0 %v1542_v6  ;;  %s1728_s4 = scalar_lea.vmem %s1351_s14, 256  ;;  %p1733_p3 = scmp.lt.s32.totalorder %s1351_s14, %s1351_s14 }
  0x2f   :  { %p1729_p2 = scmp.ne.s32.totalorder %s1351_s14, %s1728_s4  ;;  %p1734_p4 = scmp.lt.s32.totalorder %s1728_s4, %s1728_s4 }
  0x31   :  { %1460 = vmatmul.mubr.msk.f32.vlgmr.msra.gmra.mrb[0].mxu0 %vm71_vm0, %v1863_v7  ;;  %p1735_p5 = por %p1734_p4, %p1733_p3 }
  0x33   :  { %p1736_p6 = pnand %p1735_p5, %p1729_p2 }
 0x104   :  { %v1461_v9 = vpop.f32.mrb[0].mxu0 }
 0x105   :  { %v1870_v10 = vadd.f32 %v1461_v9, %v1363_v8  ;;  %v144_v11 = vpop.f32.mrb[1].mxu0 }
 0x106   :  { %v1872_v12 = vadd.f32 %v1363_v8, %v144_v11 }
 0x108   :  { %1466 = vmatprep.mubr.msk.f32.mxu1 %vm161_vm1, %v1872_v12  ;;  %v1878_v13 = vpack.i.bf16 %v1870_v10, %v1872_v12 }
 0x10a   :  { %1609 = vrot.lane.b32.xlu0 %v1878_v13, %s1760_s2 }
 0x17c   :  { %v1610_v14 = vpop.permute.xlu0 %1609 }
 0x17d   :  { %v1612_v15 = vunpack.i.h.bf16 %v1610_v14  ;;  %v1611_v16 = vunpack.i.l.bf16 %v1610_v14 }
 0x17f   :  { %v1546_v18 = vpack.c.bf16 %v1612_v15, %v1611_v16 }
 0x181   :  { %1548 = vmatprep.subr.msk.bf16.mxu1 %vm1883_vm2, %v1546_v18 }
 0x182   :  { %1551 = vmatpush3.bf16.xpose.msk.msra.mxu1 %vm1883_vm2, %v1546_v18 }
 0x189   :  { %1467 = vmatmul.mubr.msk.f32.vlgmr.msra.gmra.mrb[0].mxu1 %vm161_vm1, %v1870_v10 }
 0x25c   :  { %v1468_v21 = vpop.f32.mrb[0].mxu1 }
 0x25d   :  { %v242_v22 = vadd.f32 %v1468_v21, %v1896_v19  ;;  %v236_v23 = vpop.f32.mrb[1].mxu1 }
 0x25e   :  { %v237_v24 = vadd.f32 %v236_v23, %v1901_v20 }
 0x25f   :  { %v249_v25 = vsel %vm245_vm3, %v242_v22, -inf }
 0x260   :  { %250 = vmax.xlane.f32.xlu1 %v249_v25  ;;  %v246_v26 = vsel %vm245_vm3, %v237_v24, -inf }
 0x261   :  { %247 = vmax.xlane.f32.xlu0 %v246_v26 }
 0x271   :  { %1614 = vrot.lane.b32.xlu1 %v1878_v13, %s1761_s22 }
 0x275   :  { %1619 = vrot.lane.b32.xlu1 %v1878_v13, %s1762_s23 }
 0x277   :  { %719 = vrot.lane.b32.xlu0 %v1872_v12, %s1763_s1 }
 0x279   :  { %356 = vrot.lane.b32.xlu1 %v1872_v12, %s1764_s24 }
 0x27d   :  { %358 = vrot.lane.b32.xlu1 %v1870_v10, %s1764_s24 }
 0x281   :  { %1624 = vrot.lane.b32.xlu1 %v1878_v13, %s1765_s25 }
 0x285   :  { %721 = vrot.lane.b32.xlu1 %v1870_v10, %s1763_s1 }
 0x2ed   :  { %v251_v27 = vpop.xlane.xlu1 %250 }
 0x2ee   :  { %v253_v28 = vsub.f32 %v242_v22, %v251_v27  ;;  %v248_v29 = vpop.xlane.xlu0 %247 }
 0x2ef   :  { %v252_v30 = vsub.f32 %v237_v24, %v248_v29  ;;  %v355_v29 = vld [vmem:[#allocation5] sm:$0xff] }
 0x2f0   :  { %v256_v31 = vmul.f32 1.442695, %v253_v28  ;;  %v556_v28 = vld [vmem:[#allocation5 + $0x8] sm:$0xff] }
 0x2f1   :  { %v254_v32 = vmul.f32 1.442695, %v252_v30  ;;  %v1615_v33 = vpop.permute.xlu1 %1614 }
 0x2f2   :  { %v1617_v34 = vunpack.i.h.bf16 %v1615_v33  ;;  %v1616_v35 = vunpack.i.l.bf16 %v1615_v33  ;;  %v720_v49 = vpop.permute.xlu0 %719 }
 0x2f3   :  { %1648 = vpow2.f32 %v254_v32 }
 0x2f4   :  { %1650 = vpow2.f32 %v256_v31  ;;  %v1552_v36 = vpack.c.bf16 %v1617_v34, %v1616_v35 }
 0x2f5   :  { %v1620_v37 = vpop.permute.xlu1 %1619 }
 0x2f6   :  { %v1622_v38 = vunpack.i.h.bf16 %v1620_v37  ;;  %v1621_v39 = vunpack.i.l.bf16 %v1620_v37  ;;  %1553 = vmatprep.subr.bf16.mxu1 %v1552_v36 }
 0x2f7   :  { %1555 = vmatpush3.bf16.msra.mxu1 %v1552_v36 }
 0x2f8   :  { %v1556_v40 = vpack.c.bf16 %v1622_v38, %v1621_v39 }
 0x2f9   :  { %v357_v41 = vpop.permute.xlu1 %356 }
 0x2fa   :  { %1558 = vmatprep.subr.msk.bf16.mxu1 %vm1883_vm2, %v1556_v40 }
 0x2fd   :  { %v1649_v42 = vpop.eup %1648  ;;  %v359_v43 = vpop.permute.xlu1 %358 }
 0x2fe   :  { %v1916_v44 = vpop.eup %1650  ;;  %1473 = vmatprep.mubr.msk.f32.mxu1 %vm245_vm3, %v1649_v42  ;;  %v258_v62 = vsel %vm245_vm3, %v1649_v42, 0.0 }
 0x2ff   :  { %1474 = vmatmul.mubr.msk.f32.vlgmr.msra.gmra.mrb[2].mxu1 %vm245_vm3, %v1916_v44  ;;  %v261_v26 = vsel %vm245_vm3, %v1916_v44, 0.0 }
 0x300   :  { %1561 = vmatpush3.bf16.xpose.msk.msra.mxu1 %vm1883_vm2, %v1556_v40  ;;  %1480 = vmatprep.mubr.msk.f32.mxu1 %vm161_vm1, %v357_v41 }
 0x301   :  { %v1625_v45 = vpop.permute.xlu1 %1624 }
 0x302   :  { %v1627_v46 = vunpack.i.h.bf16 %v1625_v45  ;;  %v1626_v47 = vunpack.i.l.bf16 %v1625_v45 }
 0x304   :  { %v1566_v48 = vpack.c.bf16 %v1627_v46, %v1626_v47 }
 0x305   :  { %v722_v50 = vpop.permute.xlu1 %721 }
 0x306   :  { %1568 = vmatprep.subr.msk.bf16.mxu1 %vm1883_vm2, %v1566_v48 }
 0x307   :  { %1481 = vmatmul.mubr.msk.f32.vlgmr.msra.gmra.mrb[4].mxu1 %vm161_vm1, %v359_v43 }
 0x308   :  { %1571 = vmatpush3.bf16.xpose.msk.msra.mxu1 %vm1883_vm2, %v1566_v48  ;;  %1504 = vmatprep.mubr.msk.f32.mxu1 %vm161_vm1, %v720_v49 }
 0x30f   :  { %1505 = vmatmul.mubr.msk.f32.vlgmr.msra.gmra.mrb[6].mxu1 %vm161_vm1, %v722_v50 }
 0x3d2   :  { %v1931_v51 = vpop.f32.mrb[2].mxu1 }
 0x3d3   :  { %v1933_v52 = vpop.f32.mrb[3].mxu1 }
 0x3da   :  { %v1482_v53 = vpop.f32.mrb[4].mxu1 }
 0x3db   :  { %v444_v54 = vadd.f32 %v1482_v53, %v1896_v19  ;;  %v438_v55 = vpop.f32.mrb[5].mxu1 }
 0x3dc   :  { %v439_v56 = vadd.f32 %v438_v55, %v1901_v20 }
 0x3dd   :  { %v450_v57 = vsel %vm245_vm3, %v444_v54, -inf }
 0x3de   :  { %451 = vmax.xlane.f32.xlu0 %v450_v57  ;;  %v447_v58 = vsel %vm245_vm3, %v439_v56, -inf }
 0x3df   :  { %448 = vmax.xlane.f32.xlu1 %v447_v58 }
 0x3e2   :  { %v1506_v59 = vpop.f32.mrb[6].mxu1 }
 0x3e3   :  { %v801_v60 = vpop.f32.mrb[7].mxu1  ;;  %v807_v17 = vadd.f32 %v1506_v59, %v1896_v19 }
 0x3e4   :  { %v1944_v61 = vadd.f32 %v801_v60, %v1901_v20 }
 0x3e5   :  { %v813_v27 = vsel %vm245_vm3, %v807_v17, -inf }
 0x3e6   :  { %v810_v63 = vsel %vm245_vm3, %v1944_v61, -inf }
 0x3f0   :  { %1629 = vrot.lane.b32.xlu1 %v1878_v13, %s1766_s26 }
 0x3f4   :  { %1634 = vrot.lane.b32.xlu0 %v1878_v13, %s1767_s27  ;;  %1003 = vrot.lane.b32.xlu1 %v1872_v12, %s1768_s29 }
 0x3f8   :  { %1005 = vrot.lane.b32.xlu1 %v1870_v10, %s1768_s29 }
 0x41c   :  { %259 = vadd.xlane.f32.xlu1 %v258_v62 }
 0x420   :  { %811 = vmax.xlane.f32.xlu1 %v810_v63 }
 0x46b   :  { %v452_v0 = vpop.xlane.xlu0 %451 }
 0x46c   :  { %v454_v1 = vsub.f32 %v444_v54, %v452_v0  ;;  %v449_v2 = vpop.xlane.xlu1 %448 }
 0x46d   :  { %v453_v3 = vsub.f32 %v439_v56, %v449_v2 }
 0x46e   :  { %v457_v4 = vmul.f32 1.442695, %v454_v1 }
 0x46f   :  { %v455_v6 = vmul.f32 1.442695, %v453_v3  ;;  %v1635_v8 = vpop.permute.xlu0 %1634 }
 0x470   :  { %1652 = vpow2.f32 %v457_v4  ;;  %v1637_v9 = vunpack.i.h.bf16 %v1635_v8  ;;  %v1636_v10 = vunpack.i.l.bf16 %v1635_v8  ;;  %v1630_v11 = vpop.permute.xlu1 %1629 }
 0x471   :  { %1654 = vpow2.f32 %v455_v6  ;;  %v1632_v12 = vunpack.i.h.bf16 %v1630_v11  ;;  %v1631_v14 = vunpack.i.l.bf16 %v1630_v11 }
 0x472   :  { %v1576_v15 = vpack.c.bf16 %v1637_v9, %v1636_v10 }
 0x473   :  { %v1562_v16 = vpack.c.bf16 %v1632_v12, %v1631_v14 }
 0x474   :  { %v1004_v18 = vpop.permute.xlu1 %1003  ;;  %1578 = vmatprep.subr.msk.bf16.mxu1 %vm1883_vm2, %v1576_v15 }
 0x475   :  { %1563 = vmatprep.subr.bf16.mxu0 %v1562_v16  ;;  %1581 = vmatpush3.bf16.xpose.msk.msra.mxu1 %vm1883_vm2, %v1576_v15 }
 0x476   :  { %1523 = vmatprep.mubr.msk.f32.mxu1 %vm161_vm1, %v1004_v18  ;;  %1565 = vmatpush3.bf16.msra.mxu0 %v1562_v16 }
 0x477   :  { %1490 = vmatprep.subr.mxu0 %v556_v28 }
 0x478   :  { %v1006_v24 = vpop.permute.xlu1 %1005 }
 0x47a   :  { %v1653_v21 = vpop.eup %1652 }
 0x47b   :  { %v1655_v22 = vpop.eup %1654  ;;  %v462_v23 = vsel %vm245_vm3, %v1653_v21, 0.0 }
 0x47c   :  { %1487 = vmatprep.mubr.msk.f32.mxu0 %vm245_vm3, %v1655_v22  ;;  %463 = vadd.xlane.f32.xlu0 %v462_v23  ;;  %v459_v25 = vsel %vm245_vm3, %v1655_v22, 0.0 }
 0x47d   :  { %1524 = vmatmul.mubr.msk.f32.vlgmr.msra.gmra.mrb[8].mxu1 %vm161_vm1, %v1006_v24  ;;  %460 = vadd.xlane.f32.xlu1 %v459_v25 }
 0x47e   :  { %1488 = vmatmul.mubr.msk.f32.vlgmr.msra.gmra.mrb[2].mxu0 %vm245_vm3, %v1653_v21 }
 0x47f   :  { %1491 = vmatpush3.msra.mxu0 %v556_v28 }
 0x480   :  { %262 = vadd.xlane.f32.xlu0 %v261_v26  ;;  %1495 = vmatprep.subr.mxu0 %v355_v29 }
 0x484   :  { %814 = vmax.xlane.f32.xlu0 %v813_v27 }
 0x48e   :  { %1639 = vrot.lane.b32.xlu1 %v1878_v13, %s1769_s0 }
 0x492   :  { %1644 = vrot.lane.b32.xlu1 %v1878_v13, %s1770_s28 }
 0x4a9   :  { %v260_v32 = vpop.xlane.xlu1 %259 }
 0x4aa   :  { %1656 = vrcp.f32 %v260_v32 }
 0x4ad   :  { %v812_v34 = vpop.xlane.xlu1 %811 }
 0x4ae   :  { %v816_v37 = vsub.f32 %v1944_v61, %v812_v34  ;;  %v1398_v34 = vld [vmem:[%s2025_s5] ss:$0 sm:$0xff] }
 0x4b0   :  { %v818_v39 = vmul.f32 1.442695, %v816_v37 }
 0x4b4   :  { %v1657_v41 = vpop.eup %1656 }
 0x4b5   :  { %v353_v56 = vmul.f32 %v1657_v41, %v1933_v52  ;;  %v919_v52 = vld [vmem:[#allocation5 + $0x10] sm:$0xff] }
 0x509   :  { %v464_v30 = vpop.xlane.xlu0 %463 }
 0x50a   :  { %v461_v36 = vpop.xlane.xlu1 %460 }
 0x50b   :  { %1658 = vrcp.f32 %v461_v36 }
 0x50c   :  { %1660 = vrcp.f32 %v464_v30 }
 0x50d   :  { %v263_v31 = vpop.xlane.xlu0 %262 }
 0x50e   :  { %v1640_v13 = vpop.permute.xlu1 %1639 }
 0x50f   :  { %v1642_v45 = vunpack.i.h.bf16 %v1640_v13  ;;  %v1641_v46 = vunpack.i.l.bf16 %v1640_v13 }
 0x511   :  { %v815_v33 = vpop.xlane.xlu0 %814  ;;  %v1572_v57 = vpack.c.bf16 %v1642_v45, %v1641_v46 }
 0x512   :  { %v817_v35 = vsub.f32 %v807_v17, %v815_v33  ;;  %v1645_v60 = vpop.permute.xlu1 %1644  ;;  %v1203_v17 = vld [vmem:[#allocation5 + $0x18] sm:$0xff] }
 0x513   :  { %v1647_v0 = vunpack.i.h.bf16 %v1645_v60  ;;  %v1646_v1 = vunpack.i.l.bf16 %v1645_v60  ;;  %v1400_v60 = vld [vmem:[%s2027_s7] ss:$0 sm:$0xff] }
 0x514   :  { %v820_v38 = vmul.f32 1.442695, %v817_v35 }
 0x515   :  { %v1659_v44 = vpop.eup %1658  ;;  %v1582_v3 = vpack.c.bf16 %v1647_v0, %v1646_v1 }
 0x516   :  { %1662 = vpow2.f32 %v820_v38  ;;  %v1661_v49 = vpop.eup %1660 }
 0x517   :  { %1664 = vpow2.f32 %v818_v39 }
 0x518   :  { %1666 = vrcp.f32 %v263_v31 }
 0x520   :  { %v1663_v55 = vpop.eup %1662 }
 0x521   :  { %v1665_v58 = vpop.eup %1664 }
 0x522   :  { %v1667_v59 = vpop.eup %1666  ;;  %v822_v63 = vsel %vm245_vm3, %v1665_v58, 0.0 }
 0x523   :  { %v354_v61 = vmul.f32 %v1667_v59, %v1931_v51 }
 0x550   :  { %v1525_v40 = vpop.f32.mrb[8].mxu1 }
 0x551   :  { %v1489_v42 = vpop.f32.mrb[2].mxu0  ;;  %v1085_v43 = vpop.f32.mrb[9].mxu1  ;;  %v1091_v62 = vadd.f32 %v1525_v40, %v1896_v19 }
 0x552   :  { %v1086_v47 = vadd.f32 %v1085_v43, %v1901_v20  ;;  %v543_v48 = vpop.f32.mrb[3].mxu0  ;;  %v555_v53 = vmul.f32 %v1661_v49, %v1489_v42  ;;  %v825_v20 = vsel %vm245_vm3, %v1663_v55, 0.0 }
 0x553   :  { %v554_v50 = vmul.f32 %v1659_v44, %v543_v48  ;;  %v1097_v2 = vsel %vm245_vm3, %v1091_v62, -inf }
 0x554   :  { %v1094_v54 = vsel %vm245_vm3, %v1086_v47, -inf }
 0x555   :  { %1492 = vmatprep.mubr.msk.f32.mxu0 %vm161_vm1, %v554_v50  ;;  %1095 = vmax.xlane.f32.xlu0 %v1094_v54 }
 0x556   :  { %1493 = vmatmul.mubr.msk.f32.vlgmr.msra.gmra.mrb[4].mxu0 %vm161_vm1, %v555_v53 }
 0x557   :  { %1496 = vmatpush3.msra.mxu0 %v355_v29  ;;  %1497 = vmatprep.mubr.msk.f32.mxu0 %vm161_vm1, %v353_v56 }
 0x558   :  { %1573 = vmatprep.subr.bf16.mxu0 %v1572_v57 }
 0x559   :  { %826 = vadd.xlane.f32.xlu0 %v825_v20  ;;  %v1399_v20 = vld [vmem:[%s2026_s6] ss:$0 sm:$0xff] }
 0x55d   :  { %823 = vadd.xlane.f32.xlu0 %v822_v63 }
 0x55e   :  { %1498 = vmatmul.mubr.msk.f32.vlgmr.msra.gmra.mrb[4].mxu0 %vm161_vm1, %v354_v61 }
 0x55f   :  { %1575 = vmatpush3.bf16.msra.mxu0 %v1572_v57  ;;  %1511 = vmatprep.mubr.msk.f32.mxu0 %vm245_vm3, %v1665_v58 }
 0x560   :  { %1514 = vmatprep.subr.mxu0 %v919_v52 }
 0x561   :  { %1098 = vmax.xlane.f32.xlu0 %v1097_v2 }
 0x562   :  { %1512 = vmatmul.mubr.msk.f32.vlgmr.msra.gmra.mrb[6].mxu0 %vm245_vm3, %v1663_v55 }
 0x563   :  { %1515 = vmatpush3.msra.mxu0 %v919_v52 }
 0x564   :  { %1583 = vmatprep.subr.bf16.mxu0 %v1582_v3 }
 0x5e2   :  { %v1096_v19 = vpop.xlane.xlu0 %1095 }
 0x5e3   :  { %v1100_v51 = vsub.f32 %v1086_v47, %v1096_v19 }
 0x5e5   :  { %v1102_v4 = vmul.f32 1.442695, %v1100_v51 }
 0x5e6   :  { %v827_v6 = vpop.xlane.xlu0 %826 }
 0x5e7   :  { %1668 = vpow2.f32 %v1102_v4 }
 0x5ea   :  { %v824_v8 = vpop.xlane.xlu0 %823 }
 0x5ee   :  { %v1099_v9 = vpop.xlane.xlu0 %1098 }
 0x5ef   :  { %v1101_v10 = vsub.f32 %v1091_v62, %v1099_v9 }
 0x5f1   :  { %v1669_v11 = vpop.eup %1668  ;;  %v1104_v12 = vmul.f32 1.442695, %v1101_v10 }
 0x5f2   :  { %v1106_v14 = vsel %vm245_vm3, %v1669_v11, 0.0 }
 0x5f3   :  { %1670 = vpow2.f32 %v1104_v12  ;;  %1107 = vadd.xlane.f32.xlu0 %v1106_v14 }
 0x5f4   :  { %1672 = vrcp.f32 %v827_v6 }
 0x5f5   :  { %1674 = vrcp.f32 %v824_v8 }
 0x5fd   :  { %v1671_v15 = vpop.eup %1670 }
 0x5fe   :  { %v1109_v16 = vsel %vm245_vm3, %v1671_v15, 0.0  ;;  %v1673_v18 = vpop.eup %1672 }
 0x5ff   :  { %1110 = vadd.xlane.f32.xlu1 %v1109_v16  ;;  %v1675_v22 = vpop.eup %1674 }
 0x635   :  { %v1513_v21 = vpop.f32.mrb[6].mxu0 }
 0x636   :  { %v918_v23 = vmul.f32 %v1673_v18, %v1513_v21  ;;  %v906_v24 = vpop.f32.mrb[7].mxu0 }
 0x637   :  { %v917_v25 = vmul.f32 %v1675_v22, %v906_v24 }
 0x639   :  { %1516 = vmatprep.mubr.msk.f32.mxu0 %vm161_vm1, %v917_v25 }
 0x63a   :  { %1517 = vmatmul.mubr.msk.f32.vlgmr.msra.gmra.mrb[4].mxu0 %vm161_vm1, %v918_v23 }
 0x63b   :  { %1585 = vmatpush3.bf16.msra.mxu0 %v1582_v3  ;;  %1530 = vmatprep.mubr.msk.f32.mxu0 %vm245_vm3, %v1669_v11 }
 0x63c   :  { %1533 = vmatprep.subr.mxu0 %v1203_v17 }
 0x63e   :  { %1531 = vmatmul.mubr.msk.f32.vlgmr.msra.gmra.mrb[8].mxu0 %vm245_vm3, %v1671_v15 }
 0x63f   :  { %1534 = vmatpush3.msra.mxu0 %v1203_v17 }
 0x680   :  { %v1108_v26 = vpop.xlane.xlu0 %1107 }
 0x681   :  { %1676 = vrcp.f32 %v1108_v26 }
 0x68b   :  { %v1677_v29 = vpop.eup %1676 }
 0x68c   :  { %v1111_v27 = vpop.xlane.xlu1 %1110 }
 0x68d   :  { %1678 = vrcp.f32 %v1111_v27 }
 0x697   :  { %v1679_v31 = vpop.eup %1678 }
 0x711   :  { %v1532_v28 = vpop.f32.mrb[8].mxu0 }
 0x712   :  { %v1190_v30 = vpop.f32.mrb[9].mxu0  ;;  %v1202_v33 = vmul.f32 %v1679_v31, %v1532_v28 }
 0x713   :  { %v1201_v32 = vmul.f32 %v1677_v29, %v1190_v30 }
 0x715   :  { %1535 = vmatprep.mubr.msk.f32.mxu0 %vm161_vm1, %v1201_v32 }
 0x716   :  { %1536 = vmatmul.mubr.msk.f32.vlgmr.msra.gmra.mrb[4].mxu0 %vm161_vm1, %v1202_v33 }
 0x7e9   :  { %v1537_v35 = vpop.f32.mrb[4].mxu0 }
 0x7ea   :  { %v1276_v36 = vpop.f32.mrb[5].mxu0  ;;  %v1295_v37 = vadd.f32 %v1537_v35, %v1398_v34 }
 0x7eb   :  { %v1294_v38 = vadd.f32 %v1398_v34, %v1276_v36 }
 0x7ec   :  { %v1297_v40 = vadd.f32 %v1295_v37, %v1863_v7 }
 0x7ed   :  { %v1296_v39 = vadd.f32 %v1294_v38, %v1859_v5 }
 0x7ee   :  { %v1301_v41 = vsel %vm71_vm0, %v1297_v40, 0.0 }
 0x7ef   :  { %v1298_v13 = vsel %vm71_vm0, %v1296_v39, 0.0 }
 0x7f0   :  { %1299 = vadd.xlane.f32.xlu0 %v1298_v13 }
 0x7f4   :  { %1302 = vadd.xlane.f32.xlu0 %v1301_v41 }
 0x87d   :  { %v1300_v42 = vpop.xlane.xlu0 %1299 }
 0x87e   :  { %v1305_v43 = vmul.f32 0.03125, %v1300_v42 }
 0x880   :  { %v1307_v44 = vsub.f32 %v1296_v39, %v1305_v43 }
 0x881   :  { %v1303_v45 = vpop.xlane.xlu0 %1302 }
 0x882   :  { %v1306_v46 = vmul.f32 0.03125, %v1303_v45  ;;  %v1309_v47 = vmul.f32 %v1307_v44, %v1307_v44 }
 0x884   :  { %v1308_v48 = vsub.f32 %v1297_v40, %v1306_v46  ;;  %v1311_v49 = vsel %vm71_vm0, %v1309_v47, 0.0 }
 0x885   :  { %1312 = vadd.xlane.f32.xlu0 %v1311_v49 }
 0x886   :  { %v1310_v50 = vmul.f32 %v1308_v48, %v1308_v48 }
 0x888   :  { %v1314_v5 = vsel %vm71_vm0, %v1310_v50, 0.0 }
 0x889   :  { %1315 = vadd.xlane.f32.xlu0 %v1314_v5 }
 0x912   :  { %v1313_v53 = vpop.xlane.xlu0 %1312 }
 0x913   :  { %v1317_v7 = vmul.f32 0.03125, %v1313_v53 }
 0x915   :  { %v1319_v54 = vadd.f32 1e-12, %v1317_v7 }
 0x916   :  { %v1316_v55 = vpop.xlane.xlu0 %1315 }
 0x917   :  { %1680 = vrsqrt.f32 %v1319_v54  ;;  %v1318_v56 = vmul.f32 0.03125, %v1316_v55 }
 0x919   :  { %v1320_v57 = vadd.f32 1e-12, %v1318_v56 }
 0x91b   :  { %1682 = vrsqrt.f32 %v1320_v57 }
 0x921   :  { %v1681_v58 = vpop.eup %1680 }
 0x922   :  { %v1323_v59 = vmul.f32 %v1681_v58, %v1307_v44 }
 0x924   :  { %v1332_v61 = vmul.f32 %v1399_v20, %v1323_v59 }
 0x925   :  { %v1683_v62 = vpop.eup %1682 }
 0x926   :  { %v1324_v63 = vmul.f32 %v1683_v62, %v1308_v48  ;;  %v1341_v52 = vadd.f32 %v1400_v60, %v1332_v61 }
 0x928   :  { %v1333_v0 = vmul.f32 %v1399_v20, %v1324_v63  ;;  %1343 = vst.msk [vmem:[#allocation7] sm:$0xff] %vm71_vm0, %v1341_v52 }
 0x92a   :  { %v1342_v1 = vadd.f32 %v1400_v60, %v1333_v0 }
 0x92c   :  { %1344 = vst.msk [vmem:[#allocation7 + $0x8] sm:$0xff] %vm71_vm0, %v1342_v1 }
 0x92d   :  { %1739 = shalt.err (!%p1736_p6)
}
 0x92e   :  { %s1740_s17 = scalar_lea.hbm %s2028_s8, 256 }
 0x92f   :  { %p1741_p7 = scmp.ne.s32.totalorder %s2028_s8, %s1740_s17  ;;  %p1744_p8 = scmp.lt.u32.totalorder %s1740_s17, %s2028_s8 }
 0x931   :  { %p1746_p9 = pnand %p1744_p8, %p1741_p7 }
 0x933   :  { %1749 = shalt.err (!%p1746_p9)
}
 0x934   :  { %1356 = dma.vmem_to_hbm [thread:$0]  %s1351_s14, 256, %s2028_s8, [#allocation4], %s1757_s15, %s1757_s15, %s1758_s16  }
 0x935   :  { %1754 = dma.done.wait [#allocation4], 256  }
 0x936   :  { %1755 = vsyncadd [#allocation4], 4294967040 }
 0x937   :  { %1360 = vsyncpa [#allocation3], 1 }
 0x938   :  { %1361 = vsyncpa [#allocation6], 1 }
 0x939   :  { %1362 = vsyncpa [#allocation4], 1 }

</bundles_post_ra>
